<compile_context>
chip_gen: v5e
topology: v5e:2x2
jax: 0.10.0
libtpu: 0.0.40
codegen_flags: <defaults>
</compile_context>

<pallas_src>
import functools

import jax
import jax.numpy as jnp
from jax.experimental import pallas as pl
from jax.experimental.pallas import tpu as pltpu


_LANE_CANDIDATES = (4096, 2048, 1024, 512, 256, 128)
_SUBLANE = 8
_SCRATCH_HEADROOM = 8 * 1024 * 1024   # leave room for Mosaic internal scratch


def _add_weighted_kernel(coef_ref, s1_ref, s2_ref, o_ref):
    # coef_ref lives in SMEM: [alpha, beta, gamma] as f32 scalars.
    alpha = coef_ref[0]
    beta = coef_ref[1]
    gamma = coef_ref[2]
    acc = (s1_ref[...].astype(jnp.float32) * alpha
           + s2_ref[...].astype(jnp.float32) * beta
           + gamma)
    if jnp.issubdtype(o_ref.dtype, jnp.integer):
        # Round-and-saturate (cv2/kornia addWeighted semantics) instead of the
        # truncate-and-wrap behaviour of a bare astype.  Two cheap VPU ops.
        info = jnp.iinfo(o_ref.dtype)
        acc = jnp.clip(jnp.round(acc), float(info.min), float(info.max))
    o_ref[...] = acc.astype(o_ref.dtype)


@functools.lru_cache(maxsize=None)
def _tiling_params():
    """(block_bytes, vmem_limit_bytes) chosen per TPU generation."""
    try:
        info = pltpu.get_tpu_info()
        vmem_phys = int(getattr(info, "vmem_capacity_bytes", 64 << 20))
    except Exception:
        vmem_phys = 64 << 20          # conservative: v7x per-TC VMEM
    if vmem_phys >= (96 << 20):       # v5e / v6e: 128 MiB physical VMEM
        block_bytes = 16 << 20
    else:                             # v7x: 64 MiB per TensorCore
        block_bytes = 8 << 20
    # 3 arrays x 2 pipeline buffers per step, plus internal-scratch headroom.
    vmem_limit = min(vmem_phys - _SCRATCH_HEADROOM,
                     3 * 2 * block_bytes + _SCRATCH_HEADROOM)
    return int(block_bytes), int(vmem_limit)


@functools.lru_cache(maxsize=None)
def _dimension_semantics():
    """CORE_PARALLEL on multi-TC chips (v7x) so both cores stream rows."""
    try:
        info = pltpu.get_tpu_info()
        num_cores = int(getattr(info, "num_cores", 0)
                        or getattr(info, "cores_per_chip", 0)
                        or getattr(info, "num_tensorcores", 0)
                        or 1)
    except Exception:
        num_cores = 1
    if num_cores > 1:
        return (pltpu.CORE_PARALLEL,)
    return (pltpu.PARALLEL,)


def _run_slab(coefs, s1_2d, s2_2d, out_dtype):
    """Run the elementwise kernel over a lane-dense (rows, lane) slab."""
    rows, lane = s1_2d.shape
    itemsize = jnp.dtype(s1_2d.dtype).itemsize
    block_bytes, vmem_limit = _tiling_params()

    # Largest row-tile that keeps one block around block_bytes.
    target_rows = max(_SUBLANE, block_bytes // (lane * itemsize))
    target_rows = (target_rows // _SUBLANE) * _SUBLANE
    if rows <= target_rows:
        # Single full-extent block (full-extent dims bypass the (8,128) rule).
        block_rows = rows
    else:
        block_rows = target_rows
    grid = (pl.cdiv(rows, block_rows),)   # Pallas masks the partial last block.

    total = rows * lane
    cost = pl.CostEstimate(
        flops=4 * total,                      # 2 mul + 2 add per element
        transcendentals=0,
        bytes_accessed=3 * total * itemsize,  # 2 reads + 1 write
    )

    return pl.pallas_call(
        _add_weighted_kernel,
        out_shape=jax.ShapeDtypeStruct((rows, lane), out_dtype),
        grid_spec=pl.GridSpec(
            grid=grid,
            in_specs=[
                pl.BlockSpec(memory_space=pltpu.MemorySpace.SMEM),   # coeffs
                pl.BlockSpec((block_rows, lane), lambda i: (i, 0)),
                pl.BlockSpec((block_rows, lane), lambda i: (i, 0)),
            ],
            out_specs=pl.BlockSpec((block_rows, lane), lambda i: (i, 0)),
        ),
        compiler_params=pltpu.CompilerParams(
            dimension_semantics=_dimension_semantics(),
            vmem_limit_bytes=vmem_limit,
        ),
        cost_estimate=cost,
    )(coefs, s1_2d, s2_2d)


def _ref_math(s1, s2, alpha, beta, gamma, out_dtype):
    """Same semantics as the kernel, in plain jnp (tiny tensors / ragged tail)."""
    acc = (s1.astype(jnp.float32) * alpha
           + s2.astype(jnp.float32) * beta
           + gamma)
    if jnp.issubdtype(out_dtype, jnp.integer):
        info = jnp.iinfo(out_dtype)
        acc = jnp.clip(jnp.round(acc), float(info.min), float(info.max))
    return acc.astype(out_dtype)


def _add_weighted_impl(src1, src2, alpha, beta, gamma):
    orig_shape = src1.shape
    out_dtype = src1.dtype
    total = src1.size

    alpha = jnp.asarray(alpha, jnp.float32)
    beta = jnp.asarray(beta, jnp.float32)
    gamma = jnp.asarray(gamma, jnp.float32)
    coefs = jnp.stack([alpha, beta, gamma])

    flat1 = src1.reshape(-1)
    flat2 = src2.reshape(-1)

    # Widest lane that exactly divides the element count (zero pad/copy) while
    # keeping >= 8 rows so the slab stays sublane-dense; then accept any exact
    # divisor (thin tensors) before falling through to the ragged path.
    lane = next((l for l in _LANE_CANDIDATES
                 if total % l == 0 and total // l >= _SUBLANE), None)
    if lane is None:
        lane = next((l for l in _LANE_CANDIDATES if total % l == 0), None)
    if lane is not None:
        out = _run_slab(coefs,
                        flat1.reshape(-1, lane),
                        flat2.reshape(-1, lane),
                        out_dtype)
        return out.reshape(orig_shape)

    # Ragged total (not divisible by 128).
    main = (total // 128) * 128
    if main == 0:
        # Tiny tensor (< 128 elements, e.g. the 5x5 docstring case):
        # a kernel launch is not worth it.
        return _ref_math(src1, src2, alpha, beta, gamma, out_dtype)

    # Kernel streams the 128-aligned prefix; the <128-element tail is plain
    # jnp.  This replaces the old pad-both-inputs + slice-output path, which
    # added two extra full read+write passes over HBM.
    head = _run_slab(coefs,
                     flat1[:main].reshape(-1, 128),
                     flat2[:main].reshape(-1, 128),
                     out_dtype).reshape(-1)
    tail = _ref_math(flat1[main:], flat2[main:], alpha, beta, gamma, out_dtype)
    return jnp.concatenate([head, tail]).reshape(orig_shape)


_add_weighted_jit = jax.jit(_add_weighted_impl)


def add_weighted(src1, src2, alpha: float, beta: float, gamma: float):
    assert src1.shape == src2.shape, "src1/src2 must have the same shape"
    assert src1.dtype == src2.dtype, "src1/src2 must have the same dtype"
    return _add_weighted_jit(src1, src2, float(alpha), float(beta), float(gamma))


class AddWeighted:
    """JAX/Pallas equivalent of kornia AddWeighted."""

    def __init__(self, alpha: float, beta: float, gamma: float):
        self.alpha = float(alpha)
        self.beta = float(beta)
        self.gamma = float(gamma)

    def __call__(self, src1, src2):
        return add_weighted(src1, src2, self.alpha, self.beta, self.gamma)


if __name__ == "__main__":
    key = jax.random.PRNGKey(0)
    k1, k2 = jax.random.split(key)

    alpha, beta, gamma = 0.5, 0.5, 1.0
    module = AddWeighted(alpha, beta, gamma)

    # 1) Standard NCHW float case (aligned fast path; lane=256, rows=8).
    B, C, H, W = 2, 4, 16, 16
    src1 = jax.random.uniform(k1, (B, C, H, W), dtype=jnp.float32)
    src2 = jax.random.uniform(k2, (B, C, H, W), dtype=jnp.float32)
    out = jax.block_until_ready(module(src1, src2))
    ref = src1 * alpha + src2 * beta + gamma
    assert out.shape == (B, C, H, W), out.shape
    assert jnp.allclose(out, ref, atol=1e-6, rtol=1e-6), "mismatch vs reference"

    # 2) 5x5 docstring case (< 128 elements -> tiny pure-jnp path).
    s1_small = jax.random.uniform(k1, (1, 1, 5, 5), dtype=jnp.float32)
    s2_small = jax.random.uniform(k2, (1, 1, 5, 5), dtype=jnp.float32)
    out_small = jax.block_until_ready(module(s1_small, s2_small))
    ref_small = s1_small * alpha + s2_small * beta + gamma
    assert out_small.shape == (1, 1, 5, 5), out_small.shape
    assert jnp.allclose(out_small, ref_small, atol=1e-6, rtol=1e-6), "small mismatch"

    # 3) Ragged total (13x13 = 169): kernel on 128-aligned prefix + jnp tail.
    s1_r = jax.random.uniform(k1, (1, 1, 13, 13), dtype=jnp.float32)
    s2_r = jax.random.uniform(k2, (1, 1, 13, 13), dtype=jnp.float32)
    out_r = jax.block_until_ready(module(s1_r, s2_r))
    ref_r = s1_r * alpha + s2_r * beta + gamma
    assert out_r.shape == (1, 1, 13, 13), out_r.shape
    assert jnp.allclose(out_r, ref_r, atol=1e-6, rtol=1e-6), "ragged mismatch"

    # 4) uint8 image case: round + saturate (cv2/kornia addWeighted semantics).
    u1 = jax.random.randint(k1, (2, 4, 16, 16), 0, 256, dtype=jnp.int32).astype(jnp.uint8)
    u2 = jax.random.randint(k2, (2, 4, 16, 16), 0, 256, dtype=jnp.int32).astype(jnp.uint8)
    out_u = jax.block_until_ready(module(u1, u2))
    acc_u = u1.astype(jnp.float32) * alpha + u2.astype(jnp.float32) * beta + gamma
    ref_u = jnp.clip(jnp.round(acc_u), 0.0, 255.0).astype(jnp.uint8)
    assert out_u.shape == (2, 4, 16, 16), out_u.shape
    assert jnp.array_equal(out_u, ref_u), "uint8 mismatch"

    print("KERNEL_OK")
</pallas_src>

<mosaic_0001>
module attributes {stable_mosaic.version = 11 : i64} {
  func.func @_add_weighted_kernel(%arg0: i32, %arg1: memref<3xf32, #tpu.memory_space<smem>>, %arg2: memref<8x256xf32, #tpu.memory_space<vmem>>, %arg3: memref<8x256xf32, #tpu.memory_space<vmem>>, %arg4: memref<8x256xf32, #tpu.memory_space<vmem>>) attributes {dimension_semantics = [#tpu.dimension_semantics<parallel>], iteration_bounds = array<i64: 1>, scalar_prefetch = 0 : i64, scratch_operands = 0 : i64, tpu.core_type = #tpu.core_type<tc>, window_params = [{transform_indices = @transform_0, window_bounds = array<i64: 3>}, {transform_indices = @transform_1, window_bounds = array<i64: 8, 256>}, {transform_indices = @transform_2, window_bounds = array<i64: 8, 256>}, {transform_indices = @transform_3, window_bounds = array<i64: 8, 256>}]} {
    %c0 = arith.constant 0 : index
    %0 = memref.load %arg1[%c0] : memref<3xf32, #tpu.memory_space<smem>>
    %c1 = arith.constant 1 : index
    %1 = memref.load %arg1[%c1] : memref<3xf32, #tpu.memory_space<smem>>
    %c2 = arith.constant 2 : index
    %2 = memref.load %arg1[%c2] : memref<3xf32, #tpu.memory_space<smem>>
    %c0_0 = arith.constant 0 : index
    %c0_1 = arith.constant 0 : index
    %3 = vector.load %arg2[%c0_0, %c0_1] : memref<8x256xf32, #tpu.memory_space<vmem>>, vector<8x256xf32>
    %4 = vector.broadcast %0 : f32 to vector<8x256xf32>
    %5 = arith.mulf %3, %4 : vector<8x256xf32>
    %c0_2 = arith.constant 0 : index
    %c0_3 = arith.constant 0 : index
    %6 = vector.load %arg3[%c0_2, %c0_3] : memref<8x256xf32, #tpu.memory_space<vmem>>, vector<8x256xf32>
    %7 = vector.broadcast %1 : f32 to vector<8x256xf32>
    %8 = arith.mulf %6, %7 : vector<8x256xf32>
    %9 = arith.addf %5, %8 : vector<8x256xf32>
    %10 = vector.broadcast %2 : f32 to vector<8x256xf32>
    %11 = arith.addf %9, %10 : vector<8x256xf32>
    %c0_4 = arith.constant 0 : index
    %c0_5 = arith.constant 0 : index
    %12 = vector.load %arg4[%c0_4, %c0_5] : memref<8x256xf32, #tpu.memory_space<vmem>>, vector<8x256xf32>
    tpu.vector_store %arg4[%c0_4, %c0_5], %11 {strides = array<i32>} : memref<8x256xf32, #tpu.memory_space<vmem>>, vector<8x256xf32>,
    return
  }
  func.func @transform_0(%arg0: i32) -> i32 {
    %c0_i32 = arith.constant 0 : i32
    %c0_i32_0 = arith.constant 0 : i32
    return %c0_i32 : i32
  }
  func.func @transform_1(%arg0: i32) -> (i32, i32) {
    %c0_i32 = arith.constant 0 : i32
    %c0_i32_0 = arith.constant 0 : i32
    return %arg0, %c0_i32 : i32, i32
  }
  func.func @transform_2(%arg0: i32) -> (i32, i32) {
    %c0_i32 = arith.constant 0 : i32
    %c0_i32_0 = arith.constant 0 : i32
    return %arg0, %c0_i32 : i32, i32
  }
  func.func @transform_3(%arg0: i32) -> (i32, i32) {
    %c0_i32 = arith.constant 0 : i32
    %c0_i32_0 = arith.constant 0 : i32
    return %arg0, %c0_i32 : i32, i32
  }
}

</mosaic_0001>

<bundles_post_ra>
// kernel: _add_weighted_impl.1
= control target key start
LH: loop header
LB: loop body
LE: loop exit
PB: predicated region body
PF: predicated region fallthrough
CT: control target
= control target key end

     0   :  { %8 = vsyncpa [#allocation3], 0  ;;  %s69_s15 = smov [#allocation2]   ;;  %s111_s0 = inlined_call_operand.vmem [shape: f32[3], index: 0, kind: input, shape index: {}]   ;;  %s112_s1 = inlined_call_operand.vmem [shape: f32[8,256], index: 1, kind: input, shape index: {}]   ;;  %s113_s2 = inlined_call_operand.vmem [shape: f32[8,256], index: 2, kind: input, shape index: {}]   ;;  %s114_s3 = inlined_call_operand.vmem [shape: f32[8,256], index: 3, kind: output, shape index: {}]  }
   0x1   :  { %s14_s14 = sshll.u32 %s111_s0, 4  ;;  %s15_s14 = int_to_ptr.vmem [resolvable:$true] %s14_s14 }
   0x2   :  { %17 = dma.vmem_to_smem %s15_s14, 16, %s69_s15, [#allocation3]  }
   0x3   :  { %67 = dma.done.wait [#allocation3], 16  }
   0x4   :  { %68 = vsyncadd [#allocation3], 4294967280 }
   0x5   :  { %26 = sfence }
   0x6   :  { %s27_s16 = sld [smem:[#allocation2]]  ;;  %v30_v0 = vld [vmem:[%s112_s1] sm:$0xff]  ;;  %v31_v1 = vld [vmem:[%s112_s1 + $0x8] sm:$0xff] }
   0x7   :  { %s52_s17 = sld [smem:[#allocation2 + $0x1]]  ;;  %v35_v2 = vld [vmem:[%s113_s2] sm:$0xff]  ;;  %v36_v3 = vld [vmem:[%s113_s2 + $0x8] sm:$0xff] }
   0x8   :  { %s53_s18 = sld [smem:[#allocation2 + $0x2]] }
   0xc   :  { %v32_v4 = vstv %s27_s16 }
   0xd   :  { %v33_v5 = vmul.f32 %v32_v4, %v30_v0  ;;  %v37_v6 = vstv %s52_s17  ;;  %v34_v7 = vmul.f32 %v32_v4, %v31_v1 }
   0xe   :  { %v38_v8 = vmul.f32 %v37_v6, %v35_v2  ;;  %v39_v9 = vmul.f32 %v37_v6, %v36_v3  ;;  %v42_v10 = vstv %s53_s18 }
  0x10   :  { %v40_v11 = vadd.f32 %v38_v8, %v33_v5  ;;  %v41_v12 = vadd.f32 %v39_v9, %v34_v7 }
  0x12   :  { %v43_v13 = vadd.f32 %v42_v10, %v40_v11  ;;  %v44_v14 = vadd.f32 %v42_v10, %v41_v12 }
  0x14   :  { %45 = vst [vmem:[%s114_s3] sm:$0xff] %v43_v13 }
  0x15   :  { %46 = vst [vmem:[%s114_s3 + $0x8] sm:$0xff] %v44_v14 }
  0x16   :  { %51 = vsyncpa [#allocation3], 1 }

</bundles_post_ra>
